<compile_context>
chip_gen: v7x
topology: tpu7x:2x2x1
jax: 0.10.0
libtpu: 0.0.40
codegen_flags: <defaults>
</compile_context>

<pallas_src>
import functools

import jax
import jax.numpy as jnp
from jax.experimental import pallas as pl
from jax.experimental.pallas import tpu as pltpu


def _round_up(n: int, m: int) -> int:
    return ((n + m - 1) // m) * m


def _cdiv(a: int, b: int) -> int:
    return (a + b - 1) // b


# --------------------------------------------------------------------------
# Kernel: 3-layer MLP on one batch tile.  x/w* bf16, biases f32, acc f32.
# --------------------------------------------------------------------------
def mlp3_kernel(x_ref, w1_ref, b1_ref, w2_ref, b2_ref, w3_ref, b3_ref, o_ref):
    x = x_ref[...]                                                   # [TB, Kp] bf16

    # Linear(K, 300->384) + ReLU : MXU bf16 matmul, f32 accumulation
    h1 = jnp.dot(x, w1_ref[...], preferred_element_type=jnp.float32)
    h1 = jnp.maximum(h1 + b1_ref[...], 0.0)                          # f32 VPU
    h1 = h1.astype(jnp.bfloat16)

    # Linear(384, 100->128) + ReLU
    h2 = jnp.dot(h1, w2_ref[...], preferred_element_type=jnp.float32)
    h2 = jnp.maximum(h2 + b2_ref[...], 0.0)
    h2 = h2.astype(jnp.bfloat16)

    # Linear(128, out->128), no activation; lane-dense 128-wide bf16 store
    out = jnp.dot(h2, w3_ref[...], preferred_element_type=jnp.float32)
    o_ref[...] = (out + b3_ref[...]).astype(o_ref.dtype)


# --------------------------------------------------------------------------
# One-time parameter prep: pad to lane multiples of 128, cast weights to bf16.
# Call once (outside the hot path) and reuse the result for every forward.
# --------------------------------------------------------------------------
def prepare_params(params):
    w1, b1 = params["w1"], params["b1"]
    w2, b2 = params["w2"], params["b2"]
    w3, b3 = params["w3"], params["b3"]

    K, H1 = w1.shape
    H2 = w2.shape[1]
    out_dim = w3.shape[1]

    Kp = _round_up(K, 128)
    H1p = _round_up(H1, 128)      # 300 -> 384 (do NOT pad to 512; see review)
    H2p = _round_up(H2, 128)      # 100 -> 128
    Op = _round_up(out_dim, 128)  # e.g. 10 -> 128

    bf16, f32 = jnp.bfloat16, jnp.float32
    prepped = dict(
        w1=jnp.zeros((Kp, H1p), bf16).at[:K, :H1].set(w1.astype(bf16)),
        w2=jnp.zeros((H1p, H2p), bf16).at[:H1, :H2].set(w2.astype(bf16)),
        w3=jnp.zeros((H2p, Op), bf16).at[:H2, :out_dim].set(w3.astype(bf16)),
        b1=jnp.zeros((1, H1p), f32).at[:, :H1].set(b1.astype(f32).reshape(1, H1)),
        b2=jnp.zeros((1, H2p), f32).at[:, :H2].set(b2.astype(f32).reshape(1, H2)),
        b3=jnp.zeros((1, Op), f32).at[:, :out_dim].set(b3.astype(f32).reshape(1, out_dim)),
    )
    prepped = jax.tree_util.tree_map(jax.block_until_ready, prepped)
    return prepped, out_dim


def _choose_tb(B: int, max_tb: int) -> int:
    """Pick a batch tile that minimizes padding, keeps >=16 rows (bf16 sublane
    pack), and gives the grid >=2 steps when B is big enough (v7x dual-TC)."""
    n_tiles = max(_cdiv(B, max_tb), 1)
    if B >= 32:
        n_tiles = max(n_tiles, 2)
    return _round_up(_cdiv(B, n_tiles), 16)


# --------------------------------------------------------------------------
# Forward wrapper (run the whole thing under one jax.jit).
# --------------------------------------------------------------------------
def lenet_300_100_forward(x, prepped, *, out_dim: int, max_tb: int = 1024):
    """x: [B, in_dim**2] float32.  prepped: output of prepare_params()."""
    w1_p, b1_p = prepped["w1"], prepped["b1"]
    w2_p, b2_p = prepped["w2"], prepped["b2"]
    w3_p, b3_p = prepped["w3"], prepped["b3"]

    B, K = x.shape
    Kp, H1p = w1_p.shape
    H2p = w2_p.shape[1]
    Op = w3_p.shape[1]
    assert K <= Kp

    TB = _choose_tb(B, max_tb)
    Bp = _round_up(B, TB)

    bf16 = jnp.bfloat16

    # Activation: cast only when no padding is needed (common K==Kp case);
    # otherwise one fused pad+cast.  x-side zero pad keeps the K-pad exact.
    if (Bp, Kp) == (B, K):
        x_p = x.astype(bf16)
    else:
        x_p = jnp.zeros((Bp, Kp), bf16).at[:B, :K].set(x.astype(bf16))

    resident = lambda i: (0, 0)                # weights/biases: same block ∀ i

    flops = 2 * Bp * (Kp * H1p + H1p * H2p + H2p * Op)
    bytes_accessed = (
        Bp * Kp * 2                                         # x (bf16)
        + (Kp * H1p + H1p * H2p + H2p * Op) * 2             # weights (bf16)
        + (H1p + H2p + Op) * 4                              # biases (f32)
        + Bp * Op * 2                                       # out (bf16)
    )

    out_pad = pl.pallas_call(
        mlp3_kernel,
        out_shape=jax.ShapeDtypeStruct((Bp, Op), bf16),
        grid=(Bp // TB,),
        in_specs=[
            pl.BlockSpec((TB, Kp), lambda i: (i, 0)),    # x: streamed per tile
            pl.BlockSpec((Kp, H1p), resident),           # w1 (VMEM-resident)
            pl.BlockSpec((1, H1p), resident),            # b1
            pl.BlockSpec((H1p, H2p), resident),          # w2
            pl.BlockSpec((1, H2p), resident),            # b2
            pl.BlockSpec((H2p, Op), resident),           # w3
            pl.BlockSpec((1, Op), resident),             # b3
        ],
        out_specs=pl.BlockSpec((TB, Op), lambda i: (i, 0)),
        compiler_params=pltpu.CompilerParams(
            dimension_semantics=("parallel",)),
        cost_estimate=pl.CostEstimate(
            flops=flops, transcendentals=0, bytes_accessed=bytes_accessed),
    )(x_p, w1_p, b1_p, w2_p, b2_p, w3_p, b3_p)

    # Strip batch + lane padding back to the logical output (fuses under jit).
    return out_pad[:B, :out_dim]


# --------------------------------------------------------------------------
# Synthetic params + f32 reference
# --------------------------------------------------------------------------
def init_params(key, in_features, out_dim):
    """Deterministic synthetic parameters (Kaiming-uniform-ish scaling), f32."""
    k1, k2, k3, k4, k5, k6 = jax.random.split(key, 6)

    def lin(kw, kb, fan_in, fan_out):
        bound = 1.0 / jnp.sqrt(fan_in)
        w = jax.random.uniform(kw, (fan_in, fan_out), jnp.float32, -bound, bound)
        b = jax.random.uniform(kb, (1, fan_out), jnp.float32, -bound, bound)
        return w, b

    w1, b1 = lin(k1, k2, in_features, 300)
    w2, b2 = lin(k3, k4, 300, 100)
    w3, b3 = lin(k5, k6, 100, out_dim)
    return dict(w1=w1, b1=b1, w2=w2, b2=b2, w3=w3, b3=b3)


def reference_forward(x, p):
    """Pure-f32 JAX reference matching the PyTorch module semantics."""
    h1 = jnp.maximum(x @ p["w1"] + p["b1"], 0.0)
    h2 = jnp.maximum(h1 @ p["w2"] + p["b2"], 0.0)
    return h2 @ p["w3"] + p["b3"]


if __name__ == "__main__":
    in_dim = 16       # spatial size -> in_features = 16*16 = 256
    out_dim = 10
    batch = 4

    key = jax.random.PRNGKey(0)
    kx, kp = jax.random.split(key)

    # sample_input analogue: [B, 1, H, W] uniform, then flatten to [B, H*W]
    x_nchw = jax.random.uniform(kx, (batch, 1, in_dim, in_dim), jnp.float32)
    x = x_nchw.reshape(batch, in_dim * in_dim)

    params = init_params(kp, in_dim * in_dim, out_dim)

    # One-time parameter prep (pad + bf16 cast), reused for every forward call.
    prepped, out_dim_static = prepare_params(params)

    # Whole forward (pad/cast + kernel + slice) under a single jax.jit.
    fwd = jax.jit(functools.partial(lenet_300_100_forward, out_dim=out_dim_static))

    out = fwd(x, prepped)
    out = jax.block_until_ready(out)

    ref = reference_forward(x, params)
    assert out.shape == (batch, out_dim)
    # bf16 weights/activations/output with f32 accumulation -> loosened tolerance
    assert jnp.allclose(out.astype(jnp.float32), ref, atol=5e-2, rtol=5e-2), \
        "mismatch vs JAX reference"

    print("KERNEL_OK")
</pallas_src>

<mosaic_0001>
module attributes {stable_mosaic.version = 11 : i64} {
  func.func @mlp3_kernel(%arg0: i32, %arg1: memref<16x256xbf16, #tpu.memory_space<vmem>>, %arg2: memref<256x384xbf16, #tpu.memory_space<vmem>>, %arg3: memref<1x384xf32, #tpu.memory_space<vmem>>, %arg4: memref<384x128xbf16, #tpu.memory_space<vmem>>, %arg5: memref<1x128xf32, #tpu.memory_space<vmem>>, %arg6: memref<128x128xbf16, #tpu.memory_space<vmem>>, %arg7: memref<1x128xf32, #tpu.memory_space<vmem>>, %arg8: memref<16x128xbf16, #tpu.memory_space<vmem>>) attributes {dimension_semantics = [#tpu.dimension_semantics<parallel>], iteration_bounds = array<i64: 1>, scalar_prefetch = 0 : i64, scratch_operands = 0 : i64, tpu.core_type = #tpu.core_type<tc>, window_params = [{transform_indices = @transform_0, window_bounds = array<i64: 16, 256>}, {pipeline_mode = #tpu.pipeline_mode<synchronous>, transform_indices = @transform_1, window_bounds = array<i64: 256, 384>}, {pipeline_mode = #tpu.pipeline_mode<synchronous>, transform_indices = @transform_2, window_bounds = array<i64: 1, 384>}, {pipeline_mode = #tpu.pipeline_mode<synchronous>, transform_indices = @transform_3, window_bounds = array<i64: 384, 128>}, {pipeline_mode = #tpu.pipeline_mode<synchronous>, transform_indices = @transform_4, window_bounds = array<i64: 1, 128>}, {pipeline_mode = #tpu.pipeline_mode<synchronous>, transform_indices = @transform_5, window_bounds = array<i64: 128, 128>}, {pipeline_mode = #tpu.pipeline_mode<synchronous>, transform_indices = @transform_6, window_bounds = array<i64: 1, 128>}, {transform_indices = @transform_7, window_bounds = array<i64: 16, 128>}]} {
    %c0 = arith.constant 0 : index
    %c0_0 = arith.constant 0 : index
    %0 = vector.load %arg1[%c0, %c0_0] : memref<16x256xbf16, #tpu.memory_space<vmem>>, vector<16x256xbf16>
    %c0_1 = arith.constant 0 : index
    %c0_2 = arith.constant 0 : index
    %1 = vector.load %arg2[%c0_1, %c0_2] : memref<256x384xbf16, #tpu.memory_space<vmem>>, vector<256x384xbf16>
    %cst = arith.constant dense<0.000000e+00> : vector<16x384xf32>
    %2 = tpu.matmul %0, %1, %cst {dimension_numbers = #tpu.dot_dimension_numbers<[1], [0], [0], [1], [0, 0, 1, 1], [], []>} : vector<16x256xbf16>, vector<256x384xbf16>, vector<16x384xf32> -> vector<16x384xf32>
    %c0_3 = arith.constant 0 : index
    %c0_4 = arith.constant 0 : index
    %3 = vector.load %arg3[%c0_3, %c0_4] : memref<1x384xf32, #tpu.memory_space<vmem>>, vector<1x384xf32>
    %4 = vector.broadcast %3 : vector<1x384xf32> to vector<16x384xf32>
    %5 = arith.addf %2, %4 : vector<16x384xf32>
    %cst_5 = arith.constant 0.000000e+00 : f32
    %6 = vector.broadcast %cst_5 : f32 to vector<16x384xf32>
    %7 = arith.maximumf %5, %6 : vector<16x384xf32>
    %8 = arith.truncf %7 : vector<16x384xf32> to vector<16x384xbf16>
    %c0_6 = arith.constant 0 : index
    %c0_7 = arith.constant 0 : index
    %9 = vector.load %arg4[%c0_6, %c0_7] : memref<384x128xbf16, #tpu.memory_space<vmem>>, vector<384x128xbf16>
    %cst_8 = arith.constant dense<0.000000e+00> : vector<16x128xf32>
    %10 = tpu.matmul %8, %9, %cst_8 {dimension_numbers = #tpu.dot_dimension_numbers<[1], [0], [0], [1], [0, 0, 1, 1], [], []>} : vector<16x384xbf16>, vector<384x128xbf16>, vector<16x128xf32> -> vector<16x128xf32>
    %c0_9 = arith.constant 0 : index
    %c0_10 = arith.constant 0 : index
    %11 = vector.load %arg5[%c0_9, %c0_10] : memref<1x128xf32, #tpu.memory_space<vmem>>, vector<1x128xf32>
    %12 = vector.broadcast %11 : vector<1x128xf32> to vector<16x128xf32>
    %13 = arith.addf %10, %12 : vector<16x128xf32>
    %cst_11 = arith.constant 0.000000e+00 : f32
    %14 = vector.broadcast %cst_11 : f32 to vector<16x128xf32>
    %15 = arith.maximumf %13, %14 : vector<16x128xf32>
    %16 = arith.truncf %15 : vector<16x128xf32> to vector<16x128xbf16>
    %c0_12 = arith.constant 0 : index
    %c0_13 = arith.constant 0 : index
    %17 = vector.load %arg6[%c0_12, %c0_13] : memref<128x128xbf16, #tpu.memory_space<vmem>>, vector<128x128xbf16>
    %cst_14 = arith.constant dense<0.000000e+00> : vector<16x128xf32>
    %18 = tpu.matmul %16, %17, %cst_14 {dimension_numbers = #tpu.dot_dimension_numbers<[1], [0], [0], [1], [0, 0, 1, 1], [], []>} : vector<16x128xbf16>, vector<128x128xbf16>, vector<16x128xf32> -> vector<16x128xf32>
    %c0_15 = arith.constant 0 : index
    %c0_16 = arith.constant 0 : index
    %19 = vector.load %arg7[%c0_15, %c0_16] : memref<1x128xf32, #tpu.memory_space<vmem>>, vector<1x128xf32>
    %20 = vector.broadcast %19 : vector<1x128xf32> to vector<16x128xf32>
    %21 = arith.addf %18, %20 : vector<16x128xf32>
    %22 = arith.truncf %21 : vector<16x128xf32> to vector<16x128xbf16>
    %c0_17 = arith.constant 0 : index
    %c0_18 = arith.constant 0 : index
    %23 = vector.load %arg8[%c0_17, %c0_18] : memref<16x128xbf16, #tpu.memory_space<vmem>>, vector<16x128xbf16>
    tpu.vector_store %arg8[%c0_17, %c0_18], %22 {strides = array<i32>} : memref<16x128xbf16, #tpu.memory_space<vmem>>, vector<16x128xbf16>,
    return
  }
  func.func @transform_0(%arg0: i32) -> (i32, i32) {
    %c0_i32 = arith.constant 0 : i32
    %c0_i32_0 = arith.constant 0 : i32
    return %arg0, %c0_i32 : i32, i32
  }
  func.func @transform_1(%arg0: i32) -> (i32, i32) {
    %c0_i32 = arith.constant 0 : i32
    %c0_i32_0 = arith.constant 0 : i32
    %c0_i32_1 = arith.constant 0 : i32
    return %c0_i32, %c0_i32_0 : i32, i32
  }
  func.func @transform_2(%arg0: i32) -> (i32, i32) {
    %c0_i32 = arith.constant 0 : i32
    %c0_i32_0 = arith.constant 0 : i32
    %c0_i32_1 = arith.constant 0 : i32
    return %c0_i32, %c0_i32_0 : i32, i32
  }
  func.func @transform_3(%arg0: i32) -> (i32, i32) {
    %c0_i32 = arith.constant 0 : i32
    %c0_i32_0 = arith.constant 0 : i32
    %c0_i32_1 = arith.constant 0 : i32
    return %c0_i32, %c0_i32_0 : i32, i32
  }
  func.func @transform_4(%arg0: i32) -> (i32, i32) {
    %c0_i32 = arith.constant 0 : i32
    %c0_i32_0 = arith.constant 0 : i32
    %c0_i32_1 = arith.constant 0 : i32
    return %c0_i32, %c0_i32_0 : i32, i32
  }
  func.func @transform_5(%arg0: i32) -> (i32, i32) {
    %c0_i32 = arith.constant 0 : i32
    %c0_i32_0 = arith.constant 0 : i32
    %c0_i32_1 = arith.constant 0 : i32
    return %c0_i32, %c0_i32_0 : i32, i32
  }
  func.func @transform_6(%arg0: i32) -> (i32, i32) {
    %c0_i32 = arith.constant 0 : i32
    %c0_i32_0 = arith.constant 0 : i32
    %c0_i32_1 = arith.constant 0 : i32
    return %c0_i32, %c0_i32_0 : i32, i32
  }
  func.func @transform_7(%arg0: i32) -> (i32, i32) {
    %c0_i32 = arith.constant 0 : i32
    %c0_i32_0 = arith.constant 0 : i32
    return %arg0, %c0_i32 : i32, i32
  }
}

</mosaic_0001>

<bundles_post_ra>
// kernel: lenet_300_100_forward.1
= control target key start
LH: loop header
LB: loop body
LE: loop exit
PB: predicated region body
PF: predicated region fallthrough
CT: control target
= control target key end

     0   :  { %12 = vsyncpa [#allocation3], 0  ;;  %s1424_s0 = inlined_call_operand.vmem [shape: bf16[16,256], index: 0, kind: input, shape index: {}]   ;;  %s1425_s1 = inlined_call_operand.hbm [shape: bf16[256,384], index: 1, kind: input, shape index: {}]   ;;  %s1426_s2 = inlined_call_operand.vmem [shape: f32[1,384], index: 2, kind: input, shape index: {}]   ;;  %s1427_s3 = inlined_call_operand.hbm [shape: bf16[384,128], index: 3, kind: input, shape index: {}]   ;;  %s1428_s4 = inlined_call_operand.vmem [shape: f32[1,128], index: 4, kind: input, shape index: {}]   ;;  %s1429_s5 = inlined_call_operand.hbm [shape: bf16[128,128], index: 5, kind: input, shape index: {}]   ;;  %s1430_s6 = inlined_call_operand.vmem [shape: f32[1,128], index: 6, kind: input, shape index: {}]   ;;  %s1431_s7 = inlined_call_operand.vmem [shape: bf16[16,128], index: 7, kind: output, shape index: {}]  }
   0x1   :  { %13 = vsyncpa [#allocation5], 0  ;;  %s1295_s24 = smov [#allocation4]   ;;  %s1225_s28 = scalar_lea.hbm %s1427_s3, 3072 }
   0x2   :  { %s35_s25 = sshll.u32 %s1295_s24, 4  ;;  %p1226_p0 = scmp.ne.s32.totalorder %s1427_s3, %s1225_s28  ;;  %s36_s25 = int_to_ptr.vmem [resolvable:$true] %s35_s25 }
   0x3   :  { %p1229_p1 = scmp.lt.u32.totalorder %s1225_s28, %s1427_s3 }
   0x5   :  { %p1231_p2 = pnand %p1229_p1, %p1226_p0 }
   0x7   :  { %1234 = shalt.err (!%p1231_p2)
}
   0x8   :  { %s1235_s10 = scalar_lea.vmem %s36_s25, 3072  ;;  %p1240_p4 = scmp.lt.s32.totalorder %s36_s25, %s36_s25 }
   0x9   :  { %p1236_p3 = scmp.ne.s32.totalorder %s36_s25, %s1235_s10  ;;  %p1241_p5 = scmp.lt.s32.totalorder %s1235_s10, %s1235_s10 }
   0xb   :  { %p1242_p6 = por %p1241_p5, %p1240_p4 }
   0xd   :  { %p1243_p7 = pnand %p1242_p6, %p1236_p3 }
   0xf   :  { %1246 = shalt.err (!%p1243_p7)
}
  0x10   :  { %s1296_s11 = smov 64   ;;  %s1297_s12 = smov 4  }
  0x11   :  { %41 = dma.hbm_to_vmem [thread:$0]  %s1427_s3, 3072, %s36_s25, [#allocation5], %s1296_s11, %s1296_s11, %s1297_s12  }
  0x12   :  { %s1298_s15 = smov [#allocation2]   ;;  %s1247_s19 = scalar_lea.hbm %s1425_s1, 6144 }
  0x13   :  { %s21_s16 = sshll.u32 %s1298_s15, 4  ;;  %p1248_p8 = scmp.ne.s32.totalorder %s1425_s1, %s1247_s19  ;;  %s22_s16 = int_to_ptr.vmem [resolvable:$true] %s21_s16 }
  0x14   :  { %p1251_p9 = scmp.lt.u32.totalorder %s1247_s19, %s1425_s1 }
  0x16   :  { %p1253_p10 = pnand %p1251_p9, %p1248_p8 }
  0x18   :  { %1256 = shalt.err (!%p1253_p10)
}
  0x19   :  { %s1257_s24 = scalar_lea.vmem %s22_s16, 6144  ;;  %p1262_p12 = scmp.lt.s32.totalorder %s22_s16, %s22_s16 }
  0x1a   :  { %p1258_p11 = scmp.ne.s32.totalorder %s22_s16, %s1257_s24  ;;  %p1263_p13 = scmp.lt.s32.totalorder %s1257_s24, %s1257_s24 }
  0x1c   :  { %p1264_p0 = por %p1263_p13, %p1262_p12 }
  0x1e   :  { %p1265_p1 = pnand %p1264_p0, %p1258_p11 }
  0x20   :  { %1268 = shalt.err (!%p1265_p1)
}
  0x21   :  { %s1299_s3 = smov 192   ;;  %s1300_s25 = smov 12  }
  0x22   :  { %27 = dma.hbm_to_vmem [thread:$0]  %s1425_s1, 6144, %s22_s16, [#allocation3], %s1299_s3, %s1299_s3, %s1300_s25  }
  0x23   :  { %s1301_s28 = smov [#allocation6]   ;;  %s1269_s9 = scalar_lea.hbm %s1429_s5, 1024 }
  0x24   :  { %s49_s29 = sshll.u32 %s1301_s28, 4  ;;  %p1270_p2 = scmp.ne.s32.totalorder %s1429_s5, %s1269_s9  ;;  %s50_s29 = int_to_ptr.vmem [resolvable:$true] %s49_s29 }
  0x25   :  { %p1273_p3 = scmp.lt.u32.totalorder %s1269_s9, %s1429_s5 }
  0x27   :  { %p1275_p4 = pnand %p1273_p3, %p1270_p2 }
  0x29   :  { %1278 = shalt.err (!%p1275_p4)
}
  0x2a   :  { %s1279_s17 = scalar_lea.vmem %s50_s29, 1024  ;;  %p1284_p6 = scmp.lt.s32.totalorder %s50_s29, %s50_s29 }
  0x2b   :  { %p1280_p5 = scmp.ne.s32.totalorder %s50_s29, %s1279_s17  ;;  %p1285_p7 = scmp.lt.s32.totalorder %s1279_s17, %s1279_s17 }
  0x2d   :  { %p1286_p8 = por %p1285_p7, %p1284_p6 }
  0x2f   :  { %p1287_p9 = pnand %p1286_p8, %p1280_p5 }
  0x31   :  { %1290 = shalt.err (!%p1287_p9)
}
  0x32   :  { %55 = dma.hbm_to_vmem [thread:$0]  %s1429_s5, 1024, %s50_s29, [#allocation5], %s1296_s11, %s1296_s11, %s1297_s12  }
  0x33   :  { %1291 = dma.done.wait [#allocation3], 6144  }
  0x34   :  { %1292 = vsyncadd [#allocation3], 4294961152 }
  0x35   :  { %1293 = dma.done.wait [#allocation5], 4096  }
  0x36   :  { %1294 = vsyncadd [#allocation5], 4294963200  ;;  %v1126_v0 = vld [vmem:[#allocation2 + $0x4] ss:$12 sps:$4 sm:$0xff]   ;;  %v1128_v1 = vld [vmem:[#allocation2] ss:$12 sps:$4 sm:$0xff]  }
  0x37   :  { %417 = vmatprep.subr.bf16.mxu0 %v1126_v0  ;;  %v1129_v2 = vld [vmem:[#allocation2 + $0x1c] ss:$12 sps:$4 sm:$0xff]   ;;  %v1131_v3 = vld [vmem:[#allocation2 + $0x18] ss:$12 sps:$4 sm:$0xff]   ;;  %v1132_v4 = vld [vmem:[#allocation2 + $0x34] ss:$12 sps:$4 sm:$0xff]  }
  0x38   :  { %418 = vmatpush1.bf16.msra.mxu0 %v1128_v1  ;;  %v1134_v5 = vld [vmem:[#allocation2 + $0x30] ss:$12 sps:$4 sm:$0xff]   ;;  %v1135_v6 = vld [vmem:[#allocation2 + $0x4c] ss:$12 sps:$4 sm:$0xff]   ;;  %v1137_v7 = vld [vmem:[#allocation2 + $0x48] ss:$12 sps:$4 sm:$0xff]  }
  0x39   :  { %419 = vmatprep.subr.bf16.mxu0 %v1129_v2  ;;  %v1138_v8 = vld [vmem:[#allocation2 + $0x64] ss:$12 sps:$4 sm:$0xff]   ;;  %v1150_v9 = vld [vmem:[#allocation2 + $0xc8] ss:$12 sps:$4 sm:$0xff]   ;;  %v1140_v11 = vld [vmem:[#allocation2 + $0x60] ss:$12 sps:$4 sm:$0xff]  }
  0x3a   :  { %v1151_v10 = vld [vmem:[#allocation2 + $0x8] ss:$12 sps:$4 sm:$0xff]   ;;  %1015 = vmatprep.subr.bf16.mxu1 %v1150_v9  ;;  %v1155_v12 = vld [vmem:[#allocation2 + $0xe0] ss:$12 sps:$4 sm:$0xff]   ;;  %v1143_v15 = vld [vmem:[#allocation2 + $0x78] ss:$12 sps:$4 sm:$0xff]  }
  0x3b   :  { %1016 = vmatpush3.bf16.msra.mxu1 %v1151_v10  ;;  %v1156_v13 = vld [vmem:[#allocation2 + $0x20] ss:$12 sps:$4 sm:$0xff]   ;;  %v1141_v14 = vld [vmem:[#allocation2 + $0x7c] ss:$12 sps:$4 sm:$0xff]   ;;  %v1160_v16 = vld [vmem:[#allocation2 + $0xf8] ss:$12 sps:$4 sm:$0xff]  }
  0x3c   :  { %420 = vmatpush1.bf16.msra.mxu0 %v1131_v3  ;;  %1017 = vmatprep.subr.bf16.mxu1 %v1155_v12  ;;  %v1161_v17 = vld [vmem:[#allocation2 + $0x38] ss:$12 sps:$4 sm:$0xff]   ;;  %v1144_v18 = vld [vmem:[#allocation2 + $0x94] ss:$12 sps:$4 sm:$0xff]   ;;  %v1165_v19 = vld [vmem:[#allocation2 + $0x110] ss:$12 sps:$4 sm:$0xff]  }
  0x3d   :  { %421 = vmatprep.subr.bf16.mxu0 %v1132_v4  ;;  %v1166_v20 = vld [vmem:[#allocation2 + $0x50] ss:$12 sps:$4 sm:$0xff]   ;;  %v1147_v22 = vld [vmem:[#allocation2 + $0xac] ss:$12 sps:$4 sm:$0xff]   ;;  %v1170_v23 = vld [vmem:[#allocation2 + $0x128] ss:$12 sps:$4 sm:$0xff]  }
  0x3e   :  { %v1146_v21 = vld [vmem:[#allocation2 + $0x90] ss:$12 sps:$4 sm:$0xff]   ;;  %v1149_v24 = vld [vmem:[#allocation2 + $0xa8] ss:$12 sps:$4 sm:$0xff]   ;;  %v1175_v27 = vld [vmem:[#allocation2 + $0x140] ss:$12 sps:$4 sm:$0xff]  }
  0x3f   :  { %1018 = vmatpush3.bf16.msra.mxu1 %v1156_v13  ;;  %v1171_v25 = vld [vmem:[#allocation2 + $0x68] ss:$12 sps:$4 sm:$0xff]   ;;  %v1152_v26 = vld [vmem:[#allocation2 + $0xc4] ss:$12 sps:$4 sm:$0xff]   ;;  %v1154_v28 = vld [vmem:[#allocation2 + $0xc0] ss:$12 sps:$4 sm:$0xff]  }
  0x40   :  { %422 = vmatpush1.bf16.msra.mxu0 %v1134_v5  ;;  %1019 = vmatprep.subr.bf16.mxu1 %v1160_v16  ;;  %v1176_v29 = vld [vmem:[#allocation2 + $0x80] ss:$12 sps:$4 sm:$0xff]   ;;  %v1180_v30 = vld [vmem:[#allocation2 + $0x158] ss:$12 sps:$4 sm:$0xff]   ;;  %v1157_v31 = vld [vmem:[#allocation2 + $0xdc] ss:$12 sps:$4 sm:$0xff]  }
  0x41   :  { %423 = vmatprep.subr.bf16.mxu0 %v1135_v6  ;;  %v1159_v32 = vld [vmem:[#allocation2 + $0xd8] ss:$12 sps:$4 sm:$0xff]   ;;  %v1185_v34 = vld [vmem:[#allocation2 + $0x170] ss:$12 sps:$4 sm:$0xff]   ;;  %v1162_v35 = vld [vmem:[#allocation2 + $0xf4] ss:$12 sps:$4 sm:$0xff]  }
  0x42   :  { %v1181_v33 = vld [vmem:[#allocation2 + $0x98] ss:$12 sps:$4 sm:$0xff]   ;;  %v1164_v36 = vld [vmem:[#allocation2 + $0xf0] ss:$12 sps:$4 sm:$0xff]   ;;  %v1169_v41 = vld [vmem:[#allocation2 + $0x108] ss:$12 sps:$4 sm:$0xff]  }
  0x43   :  { %1020 = vmatpush3.bf16.msra.mxu1 %v1161_v17  ;;  %v1186_v37 = vld [vmem:[#allocation2 + $0xb0] ss:$12 sps:$4 sm:$0xff]   ;;  %v1192_v38 = vld [vmem:[%s1424_s0 + $0x4] ss:$8 sps:$4 sm:$0xff]   ;;  %v1190_v42 = vld [vmem:[%s1424_s0] ss:$8 sps:$4 sm:$0xff]  }
  0x44   :  { %424 = vmatpush1.bf16.msra.mxu0 %v1137_v7  ;;  %1021 = vmatprep.subr.bf16.mxu1 %v1165_v19  ;;  %v1193_v39 = vld [vmem:[#allocation4 + $0x40] sm:$0xff]   ;;  %v1167_v40 = vld [vmem:[#allocation2 + $0x10c] ss:$12 sps:$4 sm:$0xff]   ;;  %v1199_v48 = vld [vmem:[#allocation4 + $0x50] sm:$0xff]   ;;  %v1302_v61 = vmov 0.0   ;;  %vm1303_vm0 = vmmov 0  }
  0x45   :  { %425 = vmatprep.subr.bf16.mxu0 %v1138_v8  ;;  %492 = vmatprep.mubr.bf16.mxu1 %v1192_v38  ;;  %v1195_v43 = vld [vmem:[#allocation4] sm:$0xff]   ;;  %v1196_v44 = vld [vmem:[#allocation4 + $0x48] sm:$0xff]   ;;  %v1201_v52 = vld [vmem:[#allocation4 + $0x10] sm:$0xff]  }
  0x46   :  { %449 = vmatprep.mubr.bf16.mxu0 %v1192_v38  ;;  %v1172_v45 = vld [vmem:[#allocation2 + $0x124] ss:$12 sps:$4 sm:$0xff]   ;;  %v1174_v46 = vld [vmem:[#allocation2 + $0x120] ss:$12 sps:$4 sm:$0xff]   ;;  %v1177_v49 = vld [vmem:[#allocation2 + $0x13c] ss:$12 sps:$4 sm:$0xff]  }
  0x47   :  { %1022 = vmatpush3.bf16.msra.mxu1 %v1166_v20  ;;  %v1198_v47 = vld [vmem:[#allocation4 + $0x8] sm:$0xff]   ;;  %v1179_v50 = vld [vmem:[#allocation2 + $0x138] ss:$12 sps:$4 sm:$0xff]   ;;  %v1182_v51 = vld [vmem:[#allocation2 + $0x154] ss:$12 sps:$4 sm:$0xff]  }
  0x48   :  { %426 = vmatpush1.bf16.msra.mxu0 %v1140_v11  ;;  %1023 = vmatprep.subr.bf16.mxu1 %v1170_v23  ;;  %v1202_v53 = vld [vmem:[#allocation4 + $0x58] sm:$0xff]   ;;  %v1205_v56 = vld [vmem:[#allocation4 + $0x60] sm:$0xff]   ;;  %v1189_v59 = vld [vmem:[#allocation2 + $0x168] ss:$12 sps:$4 sm:$0xff]   ;;  %v136_v11 = vlaneseq }
  0x49   :  { %427 = vmatprep.subr.bf16.mxu0 %v1141_v14  ;;  %v1204_v54 = vld [vmem:[#allocation4 + $0x18] sm:$0xff]   ;;  %v1207_v58 = vld [vmem:[#allocation4 + $0x20] sm:$0xff]   ;;  %v1197_v62 = vld [vmem:[#allocation4 + $0x88] sm:$0xff]  }
  0x4a   :  { %v1184_v55 = vld [vmem:[#allocation2 + $0x150] ss:$12 sps:$4 sm:$0xff]   ;;  %v1187_v57 = vld [vmem:[#allocation2 + $0x16c] ss:$12 sps:$4 sm:$0xff]   ;;  %v1194_v60 = vld [vmem:[#allocation4 + $0x80] sm:$0xff]   ;;  %v137_v12 = vshrl.u32 %v136_v11, 7 }
  0x4b   :  { %1024 = vmatpush3.bf16.msra.mxu1 %v1171_v25  ;;  %v1200_v63 = vld [vmem:[#allocation4 + $0x90] sm:$0xff]   ;;  %v1203_v0 = vld [vmem:[#allocation4 + $0x98] sm:$0xff]   ;;  %v1206_v1 = vld [vmem:[#allocation4 + $0xa0] sm:$0xff]  }
  0x4c   :  { %428 = vmatpush1.bf16.msra.mxu0 %v1143_v15  ;;  %1025 = vmatprep.subr.bf16.mxu1 %v1175_v27  ;;  %v1208_v2 = vld [vmem:[#allocation4 + $0x68] sm:$0xff]   ;;  %v1211_v5 = vld [vmem:[#allocation4 + $0x70] sm:$0xff]   ;;  %v1214_v8 = vld [vmem:[#allocation4 + $0x78] sm:$0xff]   ;;  %v146_v13 = vsub.s32 2, %v137_v12  ;;  %v138_v27 = vsub.s32 0, %v137_v12 }
  0x4d   :  { %429 = vmatprep.subr.bf16.mxu0 %v1144_v18  ;;  %v1209_v3 = vld [vmem:[#allocation4 + $0xa8] sm:$0xff]   ;;  %v1212_v6 = vld [vmem:[#allocation4 + $0xb0] sm:$0xff]   ;;  %v1215_v9 = vld [vmem:[#allocation4 + $0xb8] sm:$0xff]  }
  0x4e   :  { %v1210_v4 = vld [vmem:[#allocation4 + $0x28] sm:$0xff]   ;;  %v1213_v7 = vld [vmem:[#allocation4 + $0x30] sm:$0xff]   ;;  %v1216_v10 = vld [vmem:[#allocation4 + $0x38] sm:$0xff]  }
  0x4f   :  { %1026 = vmatpush3.bf16.msra.mxu1 %v1176_v29  ;;  %v134_v14 = vld [vmem:[%s1426_s2] sm:$0x7] }
  0x50   :  { %430 = vmatpush1.bf16.msra.mxu0 %v1146_v21  ;;  %1027 = vmatprep.subr.bf16.mxu1 %v1180_v30  ;;  %v147_v16 = vrot.slane %v134_v14, %v146_v13  ;;  %v139_v29 = vrot.slane %v134_v14, %v138_v27 }
  0x51   :  { %431 = vmatprep.subr.bf16.mxu0 %v1147_v22 }
  0x53   :  { %1028 = vmatpush3.bf16.msra.mxu1 %v1181_v33 }
  0x54   :  { %432 = vmatpush1.bf16.msra.mxu0 %v1149_v24  ;;  %1029 = vmatprep.subr.bf16.mxu1 %v1185_v34 }
  0x55   :  { %433 = vmatprep.subr.bf16.mxu0 %v1152_v26 }
  0x57   :  { %1030 = vmatpush3.bf16.msra.mxu1 %v1186_v37 }
  0x58   :  { %434 = vmatpush1.bf16.msra.mxu0 %v1154_v28  ;;  %1037 = vmatprep.subr.bf16.mxu1 %v1193_v39  ;;  %v142_v28 = vsub.s32 1, %v137_v12 }
  0x59   :  { %435 = vmatprep.subr.bf16.mxu0 %v1157_v31 }
  0x5a   :  { %493 = vmatmul.mubr.bf16.vlgmr.msra.gmra.mrb[0].mxu1 %v1190_v42  ;;  %v143_v30 = vrot.slane %v134_v14, %v142_v28 }
  0x5b   :  { %1038 = vmatpush3.bf16.msra.mxu1 %v1195_v43 }
  0x5c   :  { %436 = vmatpush1.bf16.msra.mxu0 %v1159_v32  ;;  %1039 = vmatprep.subr.bf16.mxu1 %v1196_v44 }
  0x5d   :  { %437 = vmatprep.subr.bf16.mxu0 %v1162_v35 }
  0x5f   :  { %1040 = vmatpush3.bf16.msra.mxu1 %v1198_v47  ;;  %v1219_v47 = vld [vmem:[#allocation6 + $0x10] sm:$0xff]  }
  0x60   :  { %438 = vmatpush1.bf16.msra.mxu0 %v1164_v36  ;;  %1041 = vmatprep.subr.bf16.mxu1 %v1199_v48  ;;  %v1220_v48 = vld [vmem:[#allocation6 + $0x18] sm:$0xff]  }
  0x61   :  { %439 = vmatprep.subr.bf16.mxu0 %v1167_v40 }
  0x63   :  { %1042 = vmatpush3.bf16.msra.mxu1 %v1201_v52  ;;  %v1224_v52 = vld [vmem:[#allocation6 + $0x38] sm:$0xff]  }
  0x64   :  { %440 = vmatpush1.bf16.msra.mxu0 %v1169_v41  ;;  %1043 = vmatprep.subr.bf16.mxu1 %v1202_v53 }
  0x65   :  { %441 = vmatprep.subr.bf16.mxu0 %v1172_v45  ;;  %v1217_v45 = vld [vmem:[#allocation6] sm:$0xff]  }
  0x67   :  { %1044 = vmatpush3.bf16.msra.mxu1 %v1204_v54 }
  0x68   :  { %442 = vmatpush1.bf16.msra.mxu0 %v1174_v46  ;;  %1045 = vmatprep.subr.bf16.mxu1 %v1205_v56  ;;  %v1218_v46 = vld [vmem:[#allocation6 + $0x8] sm:$0xff]  }
  0x69   :  { %443 = vmatprep.subr.bf16.mxu0 %v1177_v49  ;;  %v1221_v49 = vld [vmem:[#allocation6 + $0x20] sm:$0xff]  }
  0x6b   :  { %1046 = vmatpush3.bf16.msra.mxu1 %v1207_v58  ;;  %v972_v58 = vld [vmem:[%s1428_s4] ss:$0 sm:$0xff] }
  0x6c   :  { %444 = vmatpush1.bf16.msra.mxu0 %v1179_v50  ;;  %1047 = vmatprep.subr.bf16.mxu1 %v1208_v2  ;;  %v1222_v50 = vld [vmem:[#allocation6 + $0x28] sm:$0xff]  }
  0x6d   :  { %445 = vmatprep.subr.bf16.mxu0 %v1182_v51  ;;  %v1223_v51 = vld [vmem:[#allocation6 + $0x30] sm:$0xff]  }
  0x6f   :  { %1048 = vmatpush3.bf16.msra.mxu1 %v1210_v4 }
  0x70   :  { %446 = vmatpush1.bf16.msra.mxu0 %v1184_v55  ;;  %1049 = vmatprep.subr.bf16.mxu1 %v1211_v5 }
  0x71   :  { %447 = vmatprep.subr.bf16.mxu0 %v1187_v57 }
  0x73   :  { %1050 = vmatpush3.bf16.msra.mxu1 %v1213_v7  ;;  %v997_v7 = vld [vmem:[%s1430_s6] ss:$0 sm:$0xff] }
  0x74   :  { %448 = vmatpush1.bf16.msra.mxu0 %v1189_v59  ;;  %1051 = vmatprep.subr.bf16.mxu1 %v1214_v8 }
  0x75   :  { %1077 = vmatprep.subr.bf16.mxu0 %v1302_v61 }
  0x77   :  { %450 = vmatmul.mubr.bf16.vlgmr.msra.gmra.mrb[0].mxu0 %v1190_v42  ;;  %1052 = vmatpush3.bf16.msra.mxu1 %v1216_v10 }
  0x78   :  { %1078 = vmatpush3.bf16.msra.mxu0 %v1194_v60  ;;  %1093 = vmatprep.mubr.msk.bf16.mxu0 %vm1303_vm0, %v1302_v61 }
  0x79   :  { %1079 = vmatprep.subr.bf16.mxu0 %v1302_v61  ;;  %1097 = vmatprep.subr.bf16.mxu1 %v1302_v61 }
  0x7c   :  { %1080 = vmatpush3.bf16.msra.mxu0 %v1197_v62 }
  0x7d   :  { %1081 = vmatprep.subr.bf16.mxu0 %v1302_v61 }
  0x80   :  { %1082 = vmatpush3.bf16.msra.mxu0 %v1200_v63 }
  0x81   :  { %1083 = vmatprep.subr.bf16.mxu0 %v1302_v61 }
  0x84   :  { %1084 = vmatpush3.bf16.msra.mxu0 %v1203_v0 }
  0x85   :  { %1085 = vmatprep.subr.bf16.mxu0 %v1302_v61 }
  0x88   :  { %1086 = vmatpush3.bf16.msra.mxu0 %v1206_v1 }
  0x89   :  { %1087 = vmatprep.subr.bf16.mxu0 %v1302_v61 }
  0x8c   :  { %1088 = vmatpush3.bf16.msra.mxu0 %v1209_v3 }
  0x8d   :  { %1089 = vmatprep.subr.bf16.mxu0 %v1302_v61 }
  0x90   :  { %1090 = vmatpush3.bf16.msra.mxu0 %v1212_v6 }
  0x91   :  { %1091 = vmatprep.subr.bf16.mxu0 %v1302_v61 }
  0x94   :  { %1092 = vmatpush3.bf16.msra.mxu0 %v1215_v9 }
 0x12d   :  { %v1031_v15 = vpop.f32.mrb[0].mxu1 }
 0x12e   :  { %v1032_v17 = vpop.f32.mrb[1].mxu1 }
 0x12f   :  { %v1033_v18 = vadd.f32 %v1032_v17, %v1031_v15  ;;  %v1034_v19 = vpop.f32.mrb[2].mxu1 }
 0x130   :  { %v1035_v20 = vpop.f32.mrb[3].mxu1 }
 0x131   :  { %v495_v21 = vadd.f32 %v1033_v18, %v147_v16  ;;  %v1036_v22 = vadd.f32 %v1035_v20, %v1034_v19 }
 0x133   :  { %v503_v23 = vmax.f32 %v495_v21, 0.0  ;;  %v498_v24 = vadd.f32 %v1036_v22, %v147_v16 }
 0x135   :  { %v506_v25 = vmax.f32 %v498_v24, 0.0 }
 0x137   :  { %v509_v26 = vpack.c.bf16 %v506_v25, %v503_v23 }
 0x139   :  { %1094 = vmatmul.mubr.bf16.vlgmr.msra.gmra.mrb[4].mxu0 %v509_v26 }
 0x14a   :  { %v451_v31 = vpop.f32.mrb[0].mxu0 }
 0x14b   :  { %v452_v32 = vadd.f32 %v451_v31, %v139_v29  ;;  %v453_v33 = vpop.f32.mrb[1].mxu0 }
 0x14c   :  { %v454_v34 = vadd.f32 %v453_v33, %v143_v30  ;;  %v455_v35 = vpop.f32.mrb[2].mxu0 }
 0x14d   :  { %v456_v36 = vadd.f32 %v455_v35, %v139_v29  ;;  %v457_v37 = vpop.f32.mrb[3].mxu0  ;;  %v501_v39 = vmax.f32 %v452_v32, 0.0 }
 0x14e   :  { %v458_v38 = vadd.f32 %v457_v37, %v143_v30  ;;  %v502_v41 = vmax.f32 %v454_v34, 0.0 }
 0x14f   :  { %v504_v40 = vmax.f32 %v456_v36, 0.0 }
 0x150   :  { %v505_v42 = vmax.f32 %v458_v38, 0.0 }
 0x151   :  { %v507_v43 = vpack.c.bf16 %v504_v40, %v501_v39 }
 0x152   :  { %v508_v44 = vpack.c.bf16 %v505_v42, %v502_v41 }
 0x154   :  { %741 = vmatprep.mubr.bf16.mxu1 %v508_v44 }
 0x155   :  { %742 = vmatmul.mubr.bf16.vlgmr.msra.gmra.mrb[4].mxu1 %v507_v43 }
 0x156   :  { %1098 = vmatpush3.bf16.msra.mxu1 %v1217_v45  ;;  %1113 = vmatprep.mubr.msk.bf16.mxu1 %vm1303_vm0, %v1302_v61 }
 0x157   :  { %1099 = vmatprep.subr.bf16.mxu1 %v1302_v61 }
 0x15a   :  { %1100 = vmatpush3.bf16.msra.mxu1 %v1218_v46 }
 0x15b   :  { %1101 = vmatprep.subr.bf16.mxu1 %v1302_v61 }
 0x15e   :  { %1102 = vmatpush3.bf16.msra.mxu1 %v1219_v47 }
 0x15f   :  { %1103 = vmatprep.subr.bf16.mxu1 %v1302_v61 }
 0x162   :  { %1104 = vmatpush3.bf16.msra.mxu1 %v1220_v48 }
 0x163   :  { %1105 = vmatprep.subr.bf16.mxu1 %v1302_v61 }
 0x166   :  { %1106 = vmatpush3.bf16.msra.mxu1 %v1221_v49 }
 0x167   :  { %1107 = vmatprep.subr.bf16.mxu1 %v1302_v61 }
 0x16a   :  { %1108 = vmatpush3.bf16.msra.mxu1 %v1222_v50 }
 0x16b   :  { %1109 = vmatprep.subr.bf16.mxu1 %v1302_v61 }
 0x16e   :  { %1110 = vmatpush3.bf16.msra.mxu1 %v1223_v51 }
 0x16f   :  { %1111 = vmatprep.subr.bf16.mxu1 %v1302_v61 }
 0x172   :  { %1112 = vmatpush3.bf16.msra.mxu1 %v1224_v52 }
 0x20c   :  { %v784_v53 = vpop.f32.mrb[4].mxu0 }
 0x20d   :  { %v1095_v54 = vpop.f32.mrb[5].mxu0 }
 0x20e   :  { %v787_v55 = vpop.f32.mrb[6].mxu0 }
 0x20f   :  { %v1096_v56 = vpop.f32.mrb[7].mxu0 }
 0x228   :  { %v1053_v57 = vpop.f32.mrb[4].mxu1 }
 0x229   :  { %v1054_v59 = vpop.f32.mrb[5].mxu1 }
 0x22a   :  { %v1055_v60 = vadd.f32 %v1054_v59, %v1053_v57  ;;  %v1056_v62 = vpop.f32.mrb[6].mxu1 }
 0x22b   :  { %v1057_v63 = vpop.f32.mrb[7].mxu1 }
 0x22c   :  { %v744_v0 = vadd.f32 %v1055_v60, %v972_v58  ;;  %v1058_v1 = vadd.f32 %v1057_v63, %v1056_v62 }
 0x22e   :  { %v785_v2 = vadd.f32 %v784_v53, %v744_v0  ;;  %v747_v3 = vadd.f32 %v1058_v1, %v972_v58 }
 0x230   :  { %v788_v61 = vadd.f32 %v787_v55, %v747_v3  ;;  %v791_v4 = vmax.f32 %v785_v2, 0.0 }
 0x232   :  { %v792_v5 = vmax.f32 %v788_v61, 0.0 }
 0x234   :  { %v793_v6 = vpack.c.bf16 %v792_v5, %v791_v4 }
 0x236   :  { %1114 = vmatmul.mubr.bf16.vlgmr.msra.gmra.mrb[8].mxu1 %v793_v6 }
 0x309   :  { %v899_v8 = vpop.f32.mrb[8].mxu1 }
 0x30a   :  { %v1115_v9 = vpop.f32.mrb[9].mxu1  ;;  %v900_v11 = vadd.f32 %v997_v7, %v899_v8 }
 0x30b   :  { %v902_v10 = vpop.f32.mrb[10].mxu1 }
 0x30c   :  { %v903_v12 = vadd.f32 %v997_v7, %v902_v10  ;;  %v1116_v13 = vpop.f32.mrb[11].mxu1 }
 0x30e   :  { %v1013_v14 = vpack.c.bf16 %v903_v12, %v900_v11 }
 0x310   :  { %1014 = vst [vmem:[%s1431_s7] sm:$0xff] %v1013_v14  }
 0x311   :  { %920 = vsyncpa [#allocation3], 1 }
 0x312   :  { %921 = vsyncpa [#allocation5], 1 }

</bundles_post_ra>
